<compile_context>
chip_gen: v7x
topology: tpu7x:2x2x1
jax: 0.10.0
libtpu: 0.0.40
codegen_flags: <defaults>
</compile_context>

<pallas_src>
import math

import jax
import jax.numpy as jnp
import numpy as np
from jax.experimental import pallas as pl
from jax.experimental.pallas import tpu as pltpu

_LANES = 128
_TARGET_BLOCK_ELEMS = 256 * 1024   # ~1 MiB of f32 per input per pipeline buffer


def _round_up(x: int, m: int) -> int:
    return ((x + m - 1) // m) * m


def _make_kernel(act_dim, n_elems, block_rows, lane_width, has_pad, inv_pos, w_grip):
    def kernel(lane_ref, out_ref, tgt_ref, part_ref):
        x = out_ref[...].astype(jnp.float32)        # (block_rows, lane_width)
        t = tgt_ref[...].astype(jnp.float32)

        # (1, W) int32 lane pattern: original column index = lane % act_dim.
        is_pos = lane_ref[...] < (act_dim - 1)      # broadcasts over rows
        is_grip = jnp.logical_not(is_pos)

        if has_pad:
            blk = pl.program_id(0)
            row = jax.lax.broadcasted_iota(jnp.int32, (block_rows, lane_width), 0)
            col = jax.lax.broadcasted_iota(jnp.int32, (block_rows, lane_width), 1)
            flat = (blk * block_rows + row) * lane_width + col
            valid = flat < n_elems
            sel_pos = jnp.logical_and(is_pos, valid)
            sel_grip = jnp.logical_and(is_grip, valid)
        else:
            sel_pos, sel_grip = is_pos, is_grip

        # --- position MSE term ---
        d = x - t

        # --- gripper BCE-with-logits term (weight = gripper_scale) ---
        # Zero non-gripper / padded logits before exp: nothing pathological hits the EUP.
        xg = jnp.where(sel_grip, x, 0.0)
        y = jnp.where(t >= 0.0, 1.0, 0.0)
        bce = jnp.maximum(xg, 0.0) - xg * y + jnp.log1p(jnp.exp(-jnp.abs(xg)))
        # TODO(synk): if this ever becomes EUP-bound, compact the gripper column in the
        # wrapper instead of evaluating (and masking) the BCE on every lane.

        # Single fused reduction: one pass, one cross-lane sum.
        contrib = jnp.where(sel_pos, d * d * inv_pos,
                            jnp.where(sel_grip, bce * w_grip, 0.0))
        part_ref[...] = jnp.sum(contrib, keepdims=True)[None]   # (1, 1, 1) partial sum

    return kernel


def mse_binary_gripper_loss(output, target, pos_scale: float = 1.0,
                            gripper_scale: float = 1.0):
    """output, target: (B, A) arrays; column A-1 is the gripper logit / target.
    pos_scale is unused in the reference forward (kept only for API parity)."""
    del pos_scale  # faithful to the PyTorch module: MSELoss() is unweighted
    assert output.shape == target.shape and output.ndim == 2
    batch, act_dim = output.shape
    assert act_dim >= 2

    n_elems = batch * act_dim
    lane_width = _LANES * act_dim // math.gcd(_LANES, act_dim)   # lcm(A, 128)
    rows_needed = -(-n_elems // lane_width)
    rows_cap = max(8, (_TARGET_BLOCK_ELEMS // lane_width) // 8 * 8)
    block_rows = min(rows_cap, _round_up(rows_needed, 8))
    num_blocks = -(-rows_needed // block_rows)
    padded_rows = num_blocks * block_rows
    padded_elems = padded_rows * lane_width
    has_pad = padded_elems != n_elems

    def as_lane_dense(a):
        flat = a.reshape(-1)                       # free row-major flatten
        if has_pad:
            flat = jnp.pad(flat, (0, padded_elems - n_elems))
        return flat.reshape(padded_rows, lane_width)

    out2 = as_lane_dense(output)
    tgt2 = as_lane_dense(target)

    # lane % act_dim for each lane; since lane_width % act_dim == 0, this is the original
    # column index of every element of the lane-dense view (same for every row/block).
    lane_col = jnp.asarray(
        (np.arange(lane_width) % act_dim).astype(np.int32)).reshape(1, lane_width)

    inv_pos = 1.0 / float(batch * (act_dim - 1))     # MSE 'mean' over B*(A-1)
    w_grip = float(gripper_scale) / float(batch)     # BCE weight folded with mean over B

    kernel = _make_kernel(act_dim, n_elems, block_rows, lane_width, has_pad,
                          inv_pos, w_grip)

    partials = pl.pallas_call(
        kernel,
        out_shape=jax.ShapeDtypeStruct((num_blocks, 1, 1), jnp.float32),
        grid_spec=pltpu.PrefetchScalarGridSpec(
            num_scalar_prefetch=0,
            grid=(num_blocks,),
            in_specs=[
                pl.BlockSpec((1, lane_width), lambda i: (0, 0)),           # lane pattern
                pl.BlockSpec((block_rows, lane_width), lambda i: (i, 0)),  # predictions
                pl.BlockSpec((block_rows, lane_width), lambda i: (i, 0)),  # targets
            ],
            out_specs=pl.BlockSpec((1, 1, 1), lambda i: (i, 0, 0)),
        ),
        compiler_params=pltpu.CompilerParams(
            dimension_semantics=("parallel",),
            vmem_limit_bytes=32 * 1024 * 1024,
        ),
    )(lane_col, out2, tgt2)

    return jnp.sum(partials)


def _reference_loss(output, target, pos_scale: float, gripper_scale: float):
    del pos_scale
    output = output.astype(jnp.float32)
    target = target.astype(jnp.float32)
    pos_out, grip_out = output[:, :-1], output[:, -1]
    pos_tgt, grip_tgt = target[:, :-1], target[:, -1]
    y = (grip_tgt >= 0).astype(jnp.float32)
    pos_loss = jnp.mean((pos_out - pos_tgt) ** 2)
    bce = (jnp.maximum(grip_out, 0.0) - grip_out * y
           + jnp.log1p(jnp.exp(-jnp.abs(grip_out))))
    return pos_loss + jnp.float32(gripper_scale) * jnp.mean(bce)


if __name__ == "__main__":
    # Small shapes consistent with the module: 8-dim action (7 position dims + 1 gripper
    # logit), batch of 8.
    B, A = 8, 8
    pos_scale = 1.0        # unused in forward (faithful to the reference module)
    gripper_scale = 2.0

    key = jax.random.PRNGKey(0)
    k_out, k_tgt = jax.random.split(key, 2)
    output = jax.random.normal(k_out, (B, A), dtype=jnp.float32)
    target = jax.random.normal(k_tgt, (B, A), dtype=jnp.float32)  # gripper col mixed signs

    loss = mse_binary_gripper_loss(output, target, pos_scale, gripper_scale)
    loss = jax.block_until_ready(loss)

    ref = _reference_loss(output, target, pos_scale, gripper_scale)
    assert jnp.allclose(loss, ref, rtol=1e-5, atol=1e-5), (loss, ref)

    print("KERNEL_OK")
</pallas_src>

<mosaic_0001>
module attributes {stable_mosaic.version = 11 : i64} {
  func.func @kernel(%arg0: i32, %arg1: memref<1x128xi32, #tpu.memory_space<vmem>>, %arg2: memref<8x128xf32, #tpu.memory_space<vmem>>, %arg3: memref<8x128xf32, #tpu.memory_space<vmem>>, %arg4: memref<1x1x1xf32, #tpu.memory_space<vmem>>) attributes {dimension_semantics = [#tpu.dimension_semantics<parallel>], iteration_bounds = array<i64: 1>, scalar_prefetch = 0 : i64, scratch_operands = 0 : i64, tpu.core_type = #tpu.core_type<tc>, window_params = [{pipeline_mode = #tpu.pipeline_mode<synchronous>, transform_indices = @transform_0, window_bounds = array<i64: 1, 128>}, {transform_indices = @transform_1, window_bounds = array<i64: 8, 128>}, {transform_indices = @transform_2, window_bounds = array<i64: 8, 128>}, {transform_indices = @transform_3, window_bounds = array<i64: 1, 1, 1>}]} {
    %c0 = arith.constant 0 : index
    %c0_0 = arith.constant 0 : index
    %0 = vector.load %arg2[%c0, %c0_0] : memref<8x128xf32, #tpu.memory_space<vmem>>, vector<8x128xf32>
    %c0_1 = arith.constant 0 : index
    %c0_2 = arith.constant 0 : index
    %1 = vector.load %arg3[%c0_1, %c0_2] : memref<8x128xf32, #tpu.memory_space<vmem>>, vector<8x128xf32>
    %c0_3 = arith.constant 0 : index
    %c0_4 = arith.constant 0 : index
    %2 = vector.load %arg1[%c0_3, %c0_4] : memref<1x128xi32, #tpu.memory_space<vmem>>, vector<1x128xi32>
    %c7_i32 = arith.constant 7 : i32
    %3 = vector.broadcast %c7_i32 : i32 to vector<1x128xi32>
    %4 = arith.cmpi slt, %2, %3 : vector<1x128xi32>
    %cst = arith.constant dense<true> : vector<1x128xi1>
    %5 = arith.xori %4, %cst : vector<1x128xi1>
    %6 = tpu.iota {dimensions = array<i32: 0>} : vector<8x128xi32>
    %7 = tpu.iota {dimensions = array<i32: 1>} : vector<8x128xi32>
    %c8_i32 = arith.constant 8 : i32
    %8 = arith.muli %arg0, %c8_i32 : i32
    %9 = vector.broadcast %8 : i32 to vector<8x128xi32>
    %10 = arith.addi %9, %6 : vector<8x128xi32>
    %c128_i32 = arith.constant 128 : i32
    %11 = vector.broadcast %c128_i32 : i32 to vector<8x128xi32>
    %12 = arith.muli %10, %11 : vector<8x128xi32>
    %13 = arith.addi %12, %7 : vector<8x128xi32>
    %c64_i32 = arith.constant 64 : i32
    %14 = vector.broadcast %c64_i32 : i32 to vector<8x128xi32>
    %15 = arith.cmpi slt, %13, %14 : vector<8x128xi32>
    %16 = vector.broadcast %4 : vector<1x128xi1> to vector<8x128xi1>
    %17 = arith.andi %16, %15 : vector<8x128xi1>
    %18 = vector.broadcast %5 : vector<1x128xi1> to vector<8x128xi1>
    %19 = arith.andi %18, %15 : vector<8x128xi1>
    %20 = arith.subf %0, %1 : vector<8x128xf32>
    %cst_5 = arith.constant 0.000000e+00 : f32
    %21 = vector.broadcast %cst_5 : f32 to vector<8x128xf32>
    %22 = arith.select %19, %0, %21 : vector<8x128xi1>, vector<8x128xf32>
    %cst_6 = arith.constant 0.000000e+00 : f32
    %23 = vector.broadcast %cst_6 : f32 to vector<8x128xf32>
    %24 = arith.cmpf oge, %1, %23 : vector<8x128xf32>
    %cst_7 = arith.constant 1.000000e+00 : f32
    %cst_8 = arith.constant 0.000000e+00 : f32
    %25 = vector.broadcast %cst_7 : f32 to vector<8x128xf32>
    %26 = vector.broadcast %cst_8 : f32 to vector<8x128xf32>
    %27 = arith.select %24, %25, %26 : vector<8x128xi1>, vector<8x128xf32>
    %cst_9 = arith.constant 0.000000e+00 : f32
    %28 = vector.broadcast %cst_9 : f32 to vector<8x128xf32>
    %29 = arith.maximumf %22, %28 : vector<8x128xf32>
    %30 = arith.mulf %22, %27 : vector<8x128xf32>
    %31 = arith.subf %29, %30 : vector<8x128xf32>
    %32 = math.absf %22 : vector<8x128xf32>
    %cst_10 = arith.constant 0.000000e+00 : f32
    %33 = vector.broadcast %cst_10 : f32 to vector<8x128xf32>
    %34 = arith.subf %33, %32 : vector<8x128xf32>
    %35 = math.exp %34 : vector<8x128xf32>
    %36 = math.log1p %35 : vector<8x128xf32>
    %37 = arith.addf %31, %36 : vector<8x128xf32>
    %38 = arith.mulf %20, %20 : vector<8x128xf32>
    %cst_11 = arith.constant 0.0178571437 : f32
    %39 = vector.broadcast %cst_11 : f32 to vector<8x128xf32>
    %40 = arith.mulf %38, %39 : vector<8x128xf32>
    %cst_12 = arith.constant 2.500000e-01 : f32
    %41 = vector.broadcast %cst_12 : f32 to vector<8x128xf32>
    %42 = arith.mulf %37, %41 : vector<8x128xf32>
    %cst_13 = arith.constant 0.000000e+00 : f32
    %43 = vector.broadcast %cst_13 : f32 to vector<8x128xf32>
    %44 = arith.select %19, %42, %43 : vector<8x128xi1>, vector<8x128xf32>
    %45 = arith.select %17, %40, %44 : vector<8x128xi1>, vector<8x128xf32>
    %46 = vector.shape_cast %45 : vector<8x128xf32> to vector<1x8x128xf32>
    %cst_14 = arith.constant dense<0.000000e+00> : vector<1xf32>
    %47 = vector.multi_reduction <add>, %46, %cst_14 [1, 2] : vector<1x8x128xf32> to vector<1xf32>
    %48 = vector.shape_cast %47 : vector<1xf32> to vector<1x1x1xf32>
    %49 = vector.extract %48[0, 0, 0] : f32 from vector<1x1x1xf32>
    %50 = vector.broadcast %49 : f32 to vector<1x1xf32>
    %51 = vector.shape_cast %50 : vector<1x1xf32> to vector<1x1x1xf32>
    %c0_15 = arith.constant 0 : index
    %c0_16 = arith.constant 0 : index
    %c0_17 = arith.constant 0 : index
    %52 = vector.load %arg4[%c0_15, %c0_16, %c0_17] : memref<1x1x1xf32, #tpu.memory_space<vmem>>, vector<1x1x1xf32>
    tpu.vector_store %arg4[%c0_15, %c0_16, %c0_17], %51 {strides = array<i32>} : memref<1x1x1xf32, #tpu.memory_space<vmem>>, vector<1x1x1xf32>,
    return
  }
  func.func @transform_0(%arg0: i32) -> (i32, i32) {
    %c0_i32 = arith.constant 0 : i32
    %c0_i32_0 = arith.constant 0 : i32
    %c0_i32_1 = arith.constant 0 : i32
    return %c0_i32, %c0_i32_0 : i32, i32
  }
  func.func @transform_1(%arg0: i32) -> (i32, i32) {
    %c0_i32 = arith.constant 0 : i32
    %c0_i32_0 = arith.constant 0 : i32
    return %arg0, %c0_i32 : i32, i32
  }
  func.func @transform_2(%arg0: i32) -> (i32, i32) {
    %c0_i32 = arith.constant 0 : i32
    %c0_i32_0 = arith.constant 0 : i32
    return %arg0, %c0_i32 : i32, i32
  }
  func.func @transform_3(%arg0: i32) -> (i32, i32, i32) {
    %c0_i32 = arith.constant 0 : i32
    %c0_i32_0 = arith.constant 0 : i32
    %c0_i32_1 = arith.constant 0 : i32
    return %arg0, %c0_i32, %c0_i32_0 : i32, i32, i32
  }
}

</mosaic_0001>

<bundles_post_ra>
// kernel: tpu_custom_call.1
= control target key start
LH: loop header
LB: loop body
LE: loop exit
PB: predicated region body
PF: predicated region fallthrough
CT: control target
= control target key end

     0   :  { %8 = vsyncpa [#allocation3], 0  ;;  %s327_s0 = inlined_call_operand.hbm [shape: s32[1,128], index: 0, kind: input, shape index: {}]   ;;  %s328_s1 = inlined_call_operand.hbm [shape: f32[8,128], index: 1, kind: input, shape index: {}]   ;;  %s329_s2 = inlined_call_operand.hbm [shape: f32[8,128], index: 2, kind: input, shape index: {}]   ;;  %s330_s3 = inlined_call_operand.hbm [shape: f32[1,1,1], index: 3, kind: output, shape index: {}]  }
   0x1   :  { %9 = vsyncpa [#allocation6], 0 }
   0x2   :  { %10 = vsyncpa [#allocation4], 0  ;;  %s240_s12 = smov [#allocation5]   ;;  %s241_s14 = smov [#allocation2]  }
   0x3   :  { %s27_s13 = sshll.u32 %s240_s12, 4  ;;  %s17_s15 = sshll.u32 %s241_s14, 4  ;;  %s28_s13 = int_to_ptr.vmem [resolvable:$true] %s27_s13  ;;  %s18_s15 = int_to_ptr.vmem [resolvable:$true] %s17_s15 }
   0x4   :  { %s146_s18 = scalar_lea.hbm %s328_s1, 128 }
   0x5   :  { %p147_p0 = scmp.ne.s32.totalorder %s328_s1, %s146_s18  ;;  %p150_p1 = scmp.lt.u32.totalorder %s146_s18, %s328_s1 }
   0x7   :  { %p152_p2 = pnand %p150_p1, %p147_p0 }
   0x9   :  { %155 = shalt.err (!%p152_p2)
}
   0xa   :  { %s156_s23 = scalar_lea.vmem %s28_s13, 128  ;;  %p161_p4 = scmp.lt.s32.totalorder %s28_s13, %s28_s13 }
   0xb   :  { %p157_p3 = scmp.ne.s32.totalorder %s28_s13, %s156_s23  ;;  %p162_p5 = scmp.lt.s32.totalorder %s156_s23, %s156_s23 }
   0xd   :  { %p163_p6 = por %p162_p5, %p161_p4 }
   0xf   :  { %p164_p7 = pnand %p163_p6, %p157_p3 }
  0x11   :  { %167 = shalt.err (!%p164_p7)
}
  0x12   :  { %30 = dma.hbm_to_vmem [thread:$0]  %s328_s1, 128, %s28_s13, [#allocation6]  }
  0x13   :  { %s168_s28 = scalar_lea.hbm %s327_s0, 16 }
  0x14   :  { %p169_p8 = scmp.ne.s32.totalorder %s327_s0, %s168_s28  ;;  %p172_p9 = scmp.lt.u32.totalorder %s168_s28, %s327_s0 }
  0x16   :  { %p174_p10 = pnand %p172_p9, %p169_p8 }
  0x18   :  { %177 = shalt.err (!%p174_p10)
}
  0x19   :  { %s178_s6 = scalar_lea.vmem %s18_s15, 16  ;;  %s182_s7 = scalar_lea.vmem %s18_s15, 32 }
  0x1a   :  { %p179_p11 = scmp.ne.s32.totalorder %s18_s15, %s178_s6  ;;  %p183_p12 = scmp.lt.s32.totalorder %s18_s15, %s18_s15 }
  0x1b   :  { %p184_p13 = scmp.lt.s32.totalorder %s182_s7, %s178_s6 }
  0x1d   :  { %p185_p0 = por %p184_p13, %p183_p12 }
  0x1f   :  { %p186_p1 = pnand %p185_p0, %p179_p11 }
  0x21   :  { %189 = shalt.err (!%p186_p1)
}
  0x22   :  { %20 = dma.hbm_to_vmem [thread:$0]  %s327_s0, 16, %s18_s15, [#allocation3]  }
  0x23   :  { %s242_s9 = smov [#allocation7]   ;;  %s190_s13 = scalar_lea.hbm %s329_s2, 128 }
  0x24   :  { %s37_s10 = sshll.u32 %s242_s9, 4  ;;  %p191_p2 = scmp.ne.s32.totalorder %s329_s2, %s190_s13  ;;  %s38_s10 = int_to_ptr.vmem [resolvable:$true] %s37_s10 }
  0x25   :  { %p194_p3 = scmp.lt.u32.totalorder %s190_s13, %s329_s2 }
  0x27   :  { %p196_p4 = pnand %p194_p3, %p191_p2 }
  0x29   :  { %199 = shalt.err (!%p196_p4)
}
  0x2a   :  { %s200_s19 = scalar_lea.vmem %s38_s10, 128  ;;  %p205_p6 = scmp.lt.s32.totalorder %s38_s10, %s38_s10 }
  0x2b   :  { %p201_p5 = scmp.ne.s32.totalorder %s38_s10, %s200_s19  ;;  %p206_p7 = scmp.lt.s32.totalorder %s200_s19, %s200_s19 }
  0x2d   :  { %p207_p8 = por %p206_p7, %p205_p6 }
  0x2f   :  { %p208_p9 = pnand %p207_p8, %p201_p5 }
  0x31   :  { %211 = shalt.err (!%p208_p9)
}
  0x32   :  { %40 = dma.hbm_to_vmem [thread:$0]  %s329_s2, 128, %s38_s10, [#allocation6]  }
  0x33   :  { %234 = dma.done.wait [#allocation3], 16  }
  0x34   :  { %235 = vsyncadd [#allocation3], 4294967280 }
  0x35   :  { %236 = dma.done.wait [#allocation6], 256  }
  0x36   :  { %237 = vsyncadd [#allocation6], 4294967040  ;;  %v55_v0 = vlaneseq  ;;  %v52_v4 = vld [vmem:[#allocation2] sm:$0x1]  ;;  %vm243_vm1 = vmmov 1   ;;  %v244_v7 = vmov 0  }
  0x37   :  { %vm53_vm0 = vcmp.lt.s32.totalorder %v52_v4, 7  ;;  %v50_v10 = vld [vmem:[#allocation5] sm:$0xff]  ;;  %v51_v17 = vld [vmem:[#allocation7] sm:$0xff]  ;;  %v245_v20 = vmov 0.0   ;;  %s246_s2 = smov [#allocation8]   ;;  %vm115_vm10 = vcmask 0  }
  0x38   :  { %v56_v1 = vshrl.u32 %v55_v0, 7  ;;  %v58_v2 = vand.u32 127, %v55_v0  ;;  %vm54_vm2 = vmxor %vm53_vm0, %vm243_vm1  ;;  %vm81_vm6 = vcmp.ge.f32.partialorder %v51_v17, 0.0  ;;  %v65_v23 = vsel %vm53_vm0, 1, %v244_v7  ;;  %s123_s20 = sshll.u32 %s246_s2, 4  ;;  %s124_s20 = int_to_ptr.vmem [resolvable:$true] %s123_s20 }
  0x39   :  { %v72_v8 = vsel %vm54_vm2, 1, %v244_v7  ;;  %v82_v21 = vsel %vm81_vm6, 1.0, %v245_v20  ;;  %v79_v27 = vsub.f32 %v50_v10, %v51_v17  ;;  %s212_s22 = scalar_lea.vmem %s124_s20, 16  ;;  %s216_s23 = scalar_lea.vmem %s124_s20, 32 }
  0x3a   :  { %v62_v3 = vmul.u32 128, %v56_v1  ;;  %v68_v6 = vsub.s32 0, %v56_v1  ;;  %p213_p10 = scmp.ne.s32.totalorder %s124_s20, %s212_s22  ;;  %p217_p11 = scmp.lt.s32.totalorder %s124_s20, %s124_s20 }
  0x3b   :  { %v100_v33 = vmul.f32 %v79_v27, %v79_v27  ;;  %p218_p12 = scmp.lt.s32.totalorder %s216_s23, %s212_s22 }
  0x3c   :  { %v63_v5 = vadd.s32 %v62_v3, %v58_v2  ;;  %v76_v9 = vrot.slane %v72_v8, %v68_v6  ;;  %v69_v28 = vrot.slane %v65_v23, %v68_v6 }
  0x3d   :  { %v101_v36 = vmul.f32 0.017857144, %v100_v33  ;;  %p219_p13 = por %p218_p12, %p217_p11 }
  0x3e   :  { %vm64_vm3 = vcmp.lt.s32.totalorder %v63_v5, 64  ;;  %vm77_vm4 = vcmp.eq.s32.totalorder %v76_v9, 1  ;;  %vm70_vm8 = vcmp.eq.s32.totalorder %v69_v28, 1 }
  0x3f   :  { %vm305_vm5 = vmand %vm77_vm4, %vm64_vm3  ;;  %p220_p0 = pnand %p219_p13, %p213_p10 }
  0x40   :  { %v80_v12 = vsel %vm305_vm5, %v50_v10, 0.0  ;;  %vm71_vm9 = vmand %vm70_vm8, %vm64_vm3 }
  0x41   :  { %v86_v13 = vand.u32 2147483647, %v80_v12  ;;  %v83_v24 = vmax.f32 %v80_v12, 0.0  ;;  %v84_v25 = vmul.f32 %v82_v21, %v80_v12 }
  0x43   :  { %v87_v14 = vsub.f32 0.0, %v86_v13  ;;  %v85_v31 = vsub.f32 %v83_v24, %v84_v25 }
  0x45   :  { %v88_v15 = vmul.f32 1.442695, %v87_v14 }
  0x47   :  { %142 = vpow2.f32 %v88_v15 }
  0x51   :  { %v143_v16 = vpop.eup %142 }
  0x52   :  { %v90_v18 = vadd.f32 1.0, %v143_v16  ;;  %v93_v19 = vmul.f32 -0.5, %v143_v16  ;;  %v96_v26 = vand.u32 2147483647, %v143_v16 }
  0x54   :  { %144 = vlog2.f32 %v90_v18  ;;  %v94_v22 = vadd.f32 1.0, %v93_v19  ;;  %vm97_vm7 = vcmp.lt.f32.partialorder %v96_v26, 0.0004427343 }
  0x56   :  { %v95_v29 = vmul.f32 %v143_v16, %v94_v22 }
  0x5e   :  { %v145_v30 = vpop.eup %144 }
  0x5f   :  { %v92_v32 = vmul.f32 0.6931472, %v145_v30 }
  0x61   :  { %v98_v34 = vsel %vm97_vm7, %v95_v29, %v92_v32 }
  0x62   :  { %v99_v35 = vadd.f32 %v98_v34, %v85_v31 }
  0x64   :  { %v102_v37 = vmul.f32 0.25, %v99_v35 }
  0x66   :  { %v103_v38 = vsel %vm305_vm5, %v102_v37, 0.0 }
  0x67   :  { %v104_v39 = vsel %vm71_vm9, %v101_v36, %v103_v38 }
  0x68   :  { %105 = vadd.xlane.f32.xlu0 %v104_v39 }
  0xf5   :  { %v106_v40 = vpop.xlane.xlu0 %105 }
  0xf6   :  { %v107_v41 = vrot.slane %v106_v40, 4 }
  0xf8   :  { %v108_v42 = vadd.f32 %v107_v41, %v106_v40 }
  0xfa   :  { %v109_v43 = vrot.slane %v108_v42, 2 }
  0xfc   :  { %v110_v44 = vadd.f32 %v109_v43, %v108_v42 }
  0xfe   :  { %v111_v45 = vrot.slane %v110_v44, 1 }
 0x100   :  { %v112_v46 = vadd.f32 %v111_v45, %v110_v44 }
 0x102   :  { %133 = vpush %v112_v46 }
 0x133   :  { %s134_s21 = spop %133 }
 0x134   :  { %v114_v47 = vstv %s134_s21 }
 0x135   :  { %116 = vst.msk [vmem:[#allocation8] sm:$0x1] %vm115_vm10, %v114_v47 }
 0x136   :  { %223 = shalt.err (!%p220_p0)
}
 0x137   :  { %s224_s26 = scalar_lea.hbm %s330_s3, 16 }
 0x138   :  { %p225_p1 = scmp.ne.s32.totalorder %s330_s3, %s224_s26  ;;  %p228_p2 = scmp.lt.u32.totalorder %s224_s26, %s330_s3 }
 0x13a   :  { %p230_p3 = pnand %p228_p2, %p225_p1 }
 0x13c   :  { %233 = shalt.err (!%p230_p3)
}
 0x13d   :  { %126 = dma.vmem_to_hbm [thread:$0]  %s124_s20, 16, %s330_s3, [#allocation4]  }
 0x13e   :  { %238 = dma.done.wait [#allocation4], 16  }
 0x13f   :  { %239 = vsyncadd [#allocation4], 4294967280 }
 0x140   :  { %130 = vsyncpa [#allocation3], 1 }
 0x141   :  { %131 = vsyncpa [#allocation6], 1 }
 0x142   :  { %132 = vsyncpa [#allocation4], 1 }

</bundles_post_ra>
